<compile_context>
chip_gen: v7x
topology: tpu7x:2x2x1
jax: 0.10.0
libtpu: 0.0.40
codegen_flags: <defaults>
</compile_context>

<pallas_src>
import functools

import jax
import jax.numpy as jnp
from jax.experimental import pallas as pl
from jax.experimental.pallas import tpu as pltpu


def _round_up(x, m):
    return (x + m - 1) // m * m


def _device_kind():
    try:
        return jax.devices()[0].device_kind.lower()
    except Exception:
        return ""


def _pointnet_kernel(x_ref, w1_ref, b1_ref, w2_ref, b2_ref, w3_ref, b3_ref,
                     o_ref, acc_ref, *, bt, nt, ep_dtype):
    """Transposed-orientation PointNet forward for one (batch tile, point tile).

    x_ref : (bt, c_in, nt) bf16   -- points on lanes (lane-dense block)
    w1_ref: (64, c_in)     ep     -- transposed conv1 weight
    b1_ref: (64, 1)        ep
    w2_ref: (128, 64)      bf16   -- transposed conv2 weight
    b2_ref: (128, 1)       ep
    w3_ref: (Lp, 128)      bf16   -- transposed, latent lane-padded conv3 weight
    b3_ref: (Lp, 1)        f32
    o_ref : (bt, Lp)       f32
    acc_ref: (bt, Lp, 128) f32    -- running max folded over 128-lane groups
    """
    nt_i = pl.program_id(1)
    c_in = x_ref.shape[1]
    c1 = w1_ref.shape[0]
    c2 = w2_ref.shape[0]
    lp = o_ref.shape[-1]

    # Reset the running-max accumulator at the start of every batch tile.
    @pl.when(nt_i == 0)
    def _():
        acc_ref[...] = jnp.full(acc_ref.shape, -jnp.inf, dtype=acc_ref.dtype)

    # Hoisted weight loads + broadcasts (JAX does not CSE broadcast_in_dim, so
    # do them once per grid step instead of once per batch row).
    w2 = w2_ref[...]
    w3 = w3_ref[...]
    b1 = jnp.broadcast_to(b1_ref[...], (c1, nt))
    b2 = jnp.broadcast_to(b2_ref[...], (c2, nt))
    b3 = jnp.broadcast_to(b3_ref[...], (lp, nt))
    if c_in <= 8:
        w1 = w1_ref[...]
        w1_cols = [jnp.broadcast_to(w1[:, k:k + 1], (c1, nt))
                   for k in range(c_in)]
    else:
        w1_mxu = w1_ref[...].astype(jnp.bfloat16)

    n_groups = nt // 128

    for b in range(bt):
        xb = x_ref[b]                                        # (c_in, nt) bf16

        # --- Layer 1: Conv1d(input_dim, 64, 1) ------------------------------
        if c_in <= 8:
            # Tiny K: VPU outer product (different VLIW slot than the MXU).
            xb = xb.astype(ep_dtype)
            h = w1_cols[0] * xb[0:1, :]
            for k in range(1, c_in):
                h = h + w1_cols[k] * xb[k:k + 1, :]
        else:
            h = jnp.dot(w1_mxu, xb, preferred_element_type=jnp.float32)
            h = h.astype(ep_dtype)
        h = jnp.maximum(h + b1, 0.0)                         # (64, nt) ep

        # --- Layer 2: Conv1d(64, 128, 1) + ReLU (bf16 MXU, f32 accumulate) --
        h = jnp.dot(w2, h.astype(jnp.bfloat16),
                    preferred_element_type=jnp.float32)
        h = jnp.maximum(h.astype(ep_dtype) + b2, 0.0)        # (128, nt) ep

        # --- Layer 3: Conv1d(128, latent) (latent lane-padded to Lp) --------
        h = jnp.dot(w3, h.astype(jnp.bfloat16),
                    preferred_element_type=jnp.float32)
        h = h + b3                                           # (Lp, nt) f32

        # Partial max over this point tile: fold 128-lane groups with pure VPU
        # maxes (static, lane-tile-aligned slices; padded points are edge
        # copies of a real point, so no masking is needed).
        part = h[:, 0:128]
        for g in range(1, n_groups):
            part = jnp.maximum(part, h[:, g * 128:(g + 1) * 128])
        acc_ref[b] = jnp.maximum(acc_ref[b], part)

    # Last point tile: collapse the 128 surviving lane slots per (row, channel)
    # with one small transpose + sublane reduce, store a lane-dense row block.
    @pl.when(nt_i == pl.num_programs(1) - 1)
    def _():
        for b in range(bt):
            red = jnp.max(acc_ref[b].T, axis=0, keepdims=True)   # (1, Lp)
            o_ref[pl.ds(b, 1), :] = red.astype(o_ref.dtype)


def pointnet_encoder(x, params, *, batch_tile=8, point_tile=None):
    """x: (B, N, input_dim) float32 -> (B, latent_dim) float32."""
    w1, b1, w2, b2, w3, b3 = params
    B, N, c_in = x.shape
    latent = w3.shape[1]

    kind = _device_kind()
    # bf16 VPU exists on v6e / v7x; keep f32 elementwise math elsewhere (v5e).
    ep_dtype = jnp.bfloat16 if ("v6" in kind or "v7" in kind) else jnp.float32
    if point_tile is None:
        # Bigger tiles amortize the ~600-cycle per-step overhead; v5e/v6e have
        # 128 MiB VMEM, v7x only 64 MiB, so stay smaller there / on unknowns.
        point_tile = 2048 if ("v5" in kind or "v6" in kind) else 1024
    if "v7" in kind:
        vmem_limit = 40 * 1024 * 1024
    elif "v5" in kind or "v6" in kind:
        vmem_limit = 96 * 1024 * 1024
    else:
        vmem_limit = None

    # Lane-pad the latent dim (multiple of 128) -> lane-dense layer-3 matmul
    # and output store; the wrapper slices the padding off.
    lp = _round_up(latent, 128)

    # Transposed (channels major, K on sublanes) weight / bias layouts.
    w1t = jnp.transpose(w1).astype(ep_dtype)                      # (64, c_in)
    b1t = jnp.reshape(b1, (-1, 1)).astype(ep_dtype)               # (64, 1)
    w2t = jnp.transpose(w2).astype(jnp.bfloat16)                  # (128, 64)
    b2t = jnp.reshape(b2, (-1, 1)).astype(ep_dtype)               # (128, 1)
    w3t = jnp.pad(jnp.transpose(w3),
                  ((0, lp - latent), (0, 0))).astype(jnp.bfloat16)  # (Lp, 128)
    b3t = jnp.pad(jnp.reshape(b3, (-1, 1)),
                  ((0, lp - latent), (0, 0))).astype(jnp.float32)   # (Lp, 1)

    # Batch tiling: a multi-tile batch needs bt % 8 == 0 for the (bt, Lp)
    # output block; a single full-batch tile is always legal.  B > 8 therefore
    # always yields >= 2 "parallel" batch tiles (feeds v7x's second core).
    bt = max(1, min(batch_tile, B))
    if bt < B:
        bt = max(8, bt // 8 * 8)
    if bt >= B:
        bt = B
    b_pad = _round_up(B, bt)

    # Point tiling: points live on lanes, so the tile must be a multiple of 128.
    nt = min(point_tile, _round_up(N, 128))
    nt = max(128, _round_up(nt, 128))
    n_pad = _round_up(N, nt)

    # (B, N, C) -> (B, C, N) in bf16 (the PyTorch forward transposes too).
    x_t = jnp.transpose(x, (0, 2, 1)).astype(jnp.bfloat16)
    if n_pad != N:
        # Edge-pad along points: padded points duplicate the last real point,
        # so they can never win the max -> no in-kernel masking at all.
        x_t = jnp.pad(x_t, ((0, 0), (0, 0), (0, n_pad - N)), mode="edge")
    if b_pad != B:
        x_t = jnp.pad(x_t, ((0, b_pad - B), (0, 0), (0, 0)))

    grid = (b_pad // bt, n_pad // nt)

    kernel = functools.partial(_pointnet_kernel, bt=bt, nt=nt, ep_dtype=ep_dtype)

    flops = 2 * b_pad * n_pad * (c_in * 64 + 64 * 128 + 128 * lp)
    bytes_accessed = (x_t.size * x_t.dtype.itemsize
                      + sum(a.size * a.dtype.itemsize
                            for a in (w1t, b1t, w2t, b2t, w3t, b3t))
                      + b_pad * lp * 4)

    out = pl.pallas_call(
        kernel,
        out_shape=jax.ShapeDtypeStruct((b_pad, lp), jnp.float32),
        grid_spec=pltpu.PrefetchScalarGridSpec(
            num_scalar_prefetch=0,
            grid=grid,
            in_specs=[
                pl.BlockSpec((bt, c_in, nt), lambda b, n: (b, 0, n)),  # x^T
                pl.BlockSpec(w1t.shape, lambda b, n: (0, 0)),          # w1^T
                pl.BlockSpec(b1t.shape, lambda b, n: (0, 0)),          # b1
                pl.BlockSpec(w2t.shape, lambda b, n: (0, 0)),          # w2^T
                pl.BlockSpec(b2t.shape, lambda b, n: (0, 0)),          # b2
                pl.BlockSpec(w3t.shape, lambda b, n: (0, 0)),          # w3^T
                pl.BlockSpec(b3t.shape, lambda b, n: (0, 0)),          # b3
            ],
            out_specs=pl.BlockSpec((bt, lp), lambda b, n: (b, 0)),
            scratch_shapes=[pltpu.VMEM((bt, lp, 128), jnp.float32)],
        ),
        compiler_params=pltpu.CompilerParams(
            dimension_semantics=("parallel", "arbitrary"),
            vmem_limit_bytes=vmem_limit,
        ),
        cost_estimate=pl.CostEstimate(
            flops=flops, transcendentals=0, bytes_accessed=bytes_accessed),
    )(x_t, w1t, b1t, w2t, b2t, w3t, b3t)

    return out[:B, :latent]


def init_params(key, input_dim=2, latent_dim=3):
    """Deterministic synthetic weights (same shapes as the nn.Conv1d layers)."""
    k1, k2, k3, k4, k5, k6 = jax.random.split(key, 6)

    def lin(kw, kb, cin, cout):
        scale = 1.0 / jnp.sqrt(jnp.float32(cin))
        w = jax.random.uniform(kw, (cin, cout), jnp.float32, -scale, scale)
        b = jax.random.uniform(kb, (1, cout), jnp.float32, -scale, scale)
        return w, b

    w1, b1 = lin(k1, k2, input_dim, 64)
    w2, b2 = lin(k3, k4, 64, 128)
    w3, b3 = lin(k5, k6, 128, latent_dim)
    return (w1, b1, w2, b2, w3, b3)


def pointnet_reference(x, params):
    """Pure-JAX (f32) reference of the PyTorch forward pass."""
    w1, b1, w2, b2, w3, b3 = params
    h = jnp.maximum(jnp.einsum("bnc,cd->bnd", x, w1) + b1[None], 0.0)
    h = jnp.maximum(jnp.einsum("bnc,cd->bnd", h, w2) + b2[None], 0.0)
    h = jnp.einsum("bnc,cd->bnd", h, w3) + b3[None]
    return jnp.max(h, axis=1)


if __name__ == "__main__":
    key = jax.random.PRNGKey(0)
    k_x1, k_x2, k_x3, k_p = jax.random.split(key, 4)

    input_dim, latent_dim = 2, 3
    params = init_params(k_p, input_dim=input_dim, latent_dim=latent_dim)

    def check(xx, **tile_kw):
        out = jax.block_until_ready(pointnet_encoder(xx, params, **tile_kw))
        ref = pointnet_reference(xx, params)
        assert out.shape == ref.shape, (out.shape, ref.shape)
        # bf16 x / bf16 MXU inputs with f32 accumulation -> relaxed tolerance.
        assert jnp.allclose(out, ref, atol=5e-2, rtol=5e-2), (out, ref)

    # 1) module-default small shape, single batch/point tile.
    check(jax.random.normal(k_x1, (2, 16, input_dim), jnp.float32))
    # 2) non-divisible shapes: exercises batch padding + edge point padding.
    check(jax.random.normal(k_x2, (3, 13, input_dim), jnp.float32))
    # 3) multiple batch tiles x multiple point tiles: exercises the running-max
    #    accumulator and the pl.when init/finalize path.
    check(jax.random.normal(k_x3, (16, 300, input_dim), jnp.float32),
          batch_tile=8, point_tile=128)

    print("KERNEL_OK")
</pallas_src>

<mosaic_0001>
module attributes {stable_mosaic.version = 11 : i64} {
  func.func @_pointnet_kernel(%arg0: i32, %arg1: i32, %arg2: memref<2x2x128xbf16, #tpu.memory_space<vmem>>, %arg3: memref<64x2xf32, #tpu.memory_space<vmem>>, %arg4: memref<64x1xf32, #tpu.memory_space<vmem>>, %arg5: memref<128x64xbf16, #tpu.memory_space<vmem>>, %arg6: memref<128x1xf32, #tpu.memory_space<vmem>>, %arg7: memref<128x128xbf16, #tpu.memory_space<vmem>>, %arg8: memref<128x1xf32, #tpu.memory_space<vmem>>, %arg9: memref<2x128xf32, #tpu.memory_space<vmem>>, %arg10: memref<2x128x128xf32, #tpu.memory_space<vmem>>) attributes {dimension_semantics = [#tpu.dimension_semantics<parallel>, #tpu.dimension_semantics<arbitrary>], iteration_bounds = array<i64: 1, 1>, scalar_prefetch = 0 : i64, scratch_operands = 1 : i64, tpu.core_type = #tpu.core_type<tc>, window_params = [{transform_indices = @transform_0, window_bounds = array<i64: 2, 2, 128>}, {pipeline_mode = #tpu.pipeline_mode<synchronous>, transform_indices = @transform_1, window_bounds = array<i64: 64, 2>}, {pipeline_mode = #tpu.pipeline_mode<synchronous>, transform_indices = @transform_2, window_bounds = array<i64: 64, 1>}, {pipeline_mode = #tpu.pipeline_mode<synchronous>, transform_indices = @transform_3, window_bounds = array<i64: 128, 64>}, {pipeline_mode = #tpu.pipeline_mode<synchronous>, transform_indices = @transform_4, window_bounds = array<i64: 128, 1>}, {pipeline_mode = #tpu.pipeline_mode<synchronous>, transform_indices = @transform_5, window_bounds = array<i64: 128, 128>}, {pipeline_mode = #tpu.pipeline_mode<synchronous>, transform_indices = @transform_6, window_bounds = array<i64: 128, 1>}, {transform_indices = @transform_7, window_bounds = array<i64: 2, 128>}]} {
    %c0_i32 = arith.constant 0 : i32
    %0 = arith.cmpi eq, %arg1, %c0_i32 : i32
    %1 = arith.extui %0 : i1 to i32
    %c0_i32_0 = arith.constant 0 : i32
    %2 = arith.cmpi ne, %1, %c0_i32_0 : i32
    scf.if %2 {
      %cst_38 = arith.constant 0xFF800000 : f32
      %78 = vector.broadcast %cst_38 : f32 to vector<2x128x128xf32>
      %c0_39 = arith.constant 0 : index
      %c0_40 = arith.constant 0 : index
      %c0_41 = arith.constant 0 : index
      %79 = vector.load %arg10[%c0_39, %c0_40, %c0_41] : memref<2x128x128xf32, #tpu.memory_space<vmem>>, vector<2x128x128xf32>
      tpu.vector_store %arg10[%c0_39, %c0_40, %c0_41], %78 {strides = array<i32>} : memref<2x128x128xf32, #tpu.memory_space<vmem>>, vector<2x128x128xf32>,
    } else {
    }
    %c0 = arith.constant 0 : index
    %c0_1 = arith.constant 0 : index
    %3 = vector.load %arg5[%c0, %c0_1] : memref<128x64xbf16, #tpu.memory_space<vmem>>, vector<128x64xbf16>
    %c0_2 = arith.constant 0 : index
    %c0_3 = arith.constant 0 : index
    %4 = vector.load %arg7[%c0_2, %c0_3] : memref<128x128xbf16, #tpu.memory_space<vmem>>, vector<128x128xbf16>
    %c0_4 = arith.constant 0 : index
    %c0_5 = arith.constant 0 : index
    %5 = vector.load %arg4[%c0_4, %c0_5] : memref<64x1xf32, #tpu.memory_space<vmem>>, vector<64x1xf32>
    %6 = vector.shape_cast %5 : vector<64x1xf32> to vector<64x1xf32>
    %7 = vector.broadcast %6 : vector<64x1xf32> to vector<64x128xf32>
    %c0_6 = arith.constant 0 : index
    %c0_7 = arith.constant 0 : index
    %8 = vector.load %arg6[%c0_6, %c0_7] : memref<128x1xf32, #tpu.memory_space<vmem>>, vector<128x1xf32>
    %9 = vector.shape_cast %8 : vector<128x1xf32> to vector<128x1xf32>
    %10 = vector.broadcast %9 : vector<128x1xf32> to vector<128x128xf32>
    %c0_8 = arith.constant 0 : index
    %c0_9 = arith.constant 0 : index
    %11 = vector.load %arg8[%c0_8, %c0_9] : memref<128x1xf32, #tpu.memory_space<vmem>>, vector<128x1xf32>
    %12 = vector.shape_cast %11 : vector<128x1xf32> to vector<128x1xf32>
    %13 = vector.broadcast %12 : vector<128x1xf32> to vector<128x128xf32>
    %c0_10 = arith.constant 0 : index
    %c0_11 = arith.constant 0 : index
    %14 = vector.load %arg3[%c0_10, %c0_11] : memref<64x2xf32, #tpu.memory_space<vmem>>, vector<64x2xf32>
    %15 = vector.extract_strided_slice %14 {offsets = [0, 0], sizes = [64, 1], strides = [1, 1]} : vector<64x2xf32> to vector<64x1xf32>
    %16 = vector.shape_cast %15 : vector<64x1xf32> to vector<64x1xf32>
    %17 = vector.broadcast %16 : vector<64x1xf32> to vector<64x128xf32>
    %18 = vector.extract_strided_slice %14 {offsets = [0, 1], sizes = [64, 1], strides = [1, 1]} : vector<64x2xf32> to vector<64x1xf32>
    %19 = vector.shape_cast %18 : vector<64x1xf32> to vector<64x1xf32>
    %20 = vector.broadcast %19 : vector<64x1xf32> to vector<64x128xf32>
    %c0_12 = arith.constant 0 : index
    %c0_13 = arith.constant 0 : index
    %c0_14 = arith.constant 0 : index
    %21 = vector.load %arg2[%c0_12, %c0_13, %c0_14] : memref<2x2x128xbf16, #tpu.memory_space<vmem>>, vector<1x2x128xbf16>
    %22 = vector.shape_cast %21 : vector<1x2x128xbf16> to vector<2x128xbf16>
    %23 = arith.extf %22 : vector<2x128xbf16> to vector<2x128xf32>
    %24 = vector.extract_strided_slice %23 {offsets = [0, 0], sizes = [1, 128], strides = [1, 1]} : vector<2x128xf32> to vector<1x128xf32>
    %25 = vector.broadcast %24 : vector<1x128xf32> to vector<64x128xf32>
    %26 = arith.mulf %17, %25 : vector<64x128xf32>
    %27 = vector.extract_strided_slice %23 {offsets = [1, 0], sizes = [1, 128], strides = [1, 1]} : vector<2x128xf32> to vector<1x128xf32>
    %28 = vector.broadcast %27 : vector<1x128xf32> to vector<64x128xf32>
    %29 = arith.mulf %20, %28 : vector<64x128xf32>
    %30 = arith.addf %26, %29 : vector<64x128xf32>
    %31 = arith.addf %30, %7 : vector<64x128xf32>
    %cst = arith.constant 0.000000e+00 : f32
    %32 = vector.broadcast %cst : f32 to vector<64x128xf32>
    %33 = arith.maximumf %31, %32 : vector<64x128xf32>
    %34 = arith.truncf %33 : vector<64x128xf32> to vector<64x128xbf16>
    %cst_15 = arith.constant dense<0.000000e+00> : vector<128x128xf32>
    %35 = tpu.matmul %3, %34, %cst_15 {dimension_numbers = #tpu.dot_dimension_numbers<[1], [0], [0], [1], [0, 0, 1, 1], [], []>} : vector<128x64xbf16>, vector<64x128xbf16>, vector<128x128xf32> -> vector<128x128xf32>
    %36 = arith.addf %35, %10 : vector<128x128xf32>
    %cst_16 = arith.constant 0.000000e+00 : f32
    %37 = vector.broadcast %cst_16 : f32 to vector<128x128xf32>
    %38 = arith.maximumf %36, %37 : vector<128x128xf32>
    %39 = arith.truncf %38 : vector<128x128xf32> to vector<128x128xbf16>
    %cst_17 = arith.constant dense<0.000000e+00> : vector<128x128xf32>
    %40 = tpu.matmul %4, %39, %cst_17 {dimension_numbers = #tpu.dot_dimension_numbers<[1], [0], [0], [1], [0, 0, 1, 1], [], []>} : vector<128x128xbf16>, vector<128x128xbf16>, vector<128x128xf32> -> vector<128x128xf32>
    %41 = arith.addf %40, %13 : vector<128x128xf32>
    %c0_18 = arith.constant 0 : index
    %c0_19 = arith.constant 0 : index
    %c0_20 = arith.constant 0 : index
    %42 = vector.load %arg10[%c0_18, %c0_19, %c0_20] : memref<2x128x128xf32, #tpu.memory_space<vmem>>, vector<1x128x128xf32>
    %43 = vector.shape_cast %42 : vector<1x128x128xf32> to vector<128x128xf32>
    %44 = arith.maximumf %43, %41 : vector<128x128xf32>
    %c0_21 = arith.constant 0 : index
    %c0_22 = arith.constant 0 : index
    %c0_23 = arith.constant 0 : index
    %45 = vector.load %arg10[%c0_21, %c0_22, %c0_23] : memref<2x128x128xf32, #tpu.memory_space<vmem>>, vector<1x128x128xf32>
    %46 = vector.shape_cast %45 : vector<1x128x128xf32> to vector<128x128xf32>
    %47 = vector.shape_cast %44 : vector<128x128xf32> to vector<1x128x128xf32>
    tpu.vector_store %arg10[%c0_21, %c0_22, %c0_23], %47 {strides = array<i32>} : memref<2x128x128xf32, #tpu.memory_space<vmem>>, vector<1x128x128xf32>,
    %c1 = arith.constant 1 : index
    %c0_24 = arith.constant 0 : index
    %c0_25 = arith.constant 0 : index
    %48 = vector.load %arg2[%c1, %c0_24, %c0_25] : memref<2x2x128xbf16, #tpu.memory_space<vmem>>, vector<1x2x128xbf16>
    %49 = vector.shape_cast %48 : vector<1x2x128xbf16> to vector<2x128xbf16>
    %50 = arith.extf %49 : vector<2x128xbf16> to vector<2x128xf32>
    %51 = vector.extract_strided_slice %50 {offsets = [0, 0], sizes = [1, 128], strides = [1, 1]} : vector<2x128xf32> to vector<1x128xf32>
    %52 = vector.broadcast %51 : vector<1x128xf32> to vector<64x128xf32>
    %53 = arith.mulf %17, %52 : vector<64x128xf32>
    %54 = vector.extract_strided_slice %50 {offsets = [1, 0], sizes = [1, 128], strides = [1, 1]} : vector<2x128xf32> to vector<1x128xf32>
    %55 = vector.broadcast %54 : vector<1x128xf32> to vector<64x128xf32>
    %56 = arith.mulf %20, %55 : vector<64x128xf32>
    %57 = arith.addf %53, %56 : vector<64x128xf32>
    %58 = arith.addf %57, %7 : vector<64x128xf32>
    %cst_26 = arith.constant 0.000000e+00 : f32
    %59 = vector.broadcast %cst_26 : f32 to vector<64x128xf32>
    %60 = arith.maximumf %58, %59 : vector<64x128xf32>
    %61 = arith.truncf %60 : vector<64x128xf32> to vector<64x128xbf16>
    %cst_27 = arith.constant dense<0.000000e+00> : vector<128x128xf32>
    %62 = tpu.matmul %3, %61, %cst_27 {dimension_numbers = #tpu.dot_dimension_numbers<[1], [0], [0], [1], [0, 0, 1, 1], [], []>} : vector<128x64xbf16>, vector<64x128xbf16>, vector<128x128xf32> -> vector<128x128xf32>
    %63 = arith.addf %62, %10 : vector<128x128xf32>
    %cst_28 = arith.constant 0.000000e+00 : f32
    %64 = vector.broadcast %cst_28 : f32 to vector<128x128xf32>
    %65 = arith.maximumf %63, %64 : vector<128x128xf32>
    %66 = arith.truncf %65 : vector<128x128xf32> to vector<128x128xbf16>
    %cst_29 = arith.constant dense<0.000000e+00> : vector<128x128xf32>
    %67 = tpu.matmul %4, %66, %cst_29 {dimension_numbers = #tpu.dot_dimension_numbers<[1], [0], [0], [1], [0, 0, 1, 1], [], []>} : vector<128x128xbf16>, vector<128x128xbf16>, vector<128x128xf32> -> vector<128x128xf32>
    %68 = arith.addf %67, %13 : vector<128x128xf32>
    %c1_30 = arith.constant 1 : index
    %c0_31 = arith.constant 0 : index
    %c0_32 = arith.constant 0 : index
    %69 = vector.load %arg10[%c1_30, %c0_31, %c0_32] : memref<2x128x128xf32, #tpu.memory_space<vmem>>, vector<1x128x128xf32>
    %70 = vector.shape_cast %69 : vector<1x128x128xf32> to vector<128x128xf32>
    %71 = arith.maximumf %70, %68 : vector<128x128xf32>
    %c1_33 = arith.constant 1 : index
    %c0_34 = arith.constant 0 : index
    %c0_35 = arith.constant 0 : index
    %72 = vector.load %arg10[%c1_33, %c0_34, %c0_35] : memref<2x128x128xf32, #tpu.memory_space<vmem>>, vector<1x128x128xf32>
    %73 = vector.shape_cast %72 : vector<1x128x128xf32> to vector<128x128xf32>
    %74 = vector.shape_cast %71 : vector<128x128xf32> to vector<1x128x128xf32>
    tpu.vector_store %arg10[%c1_33, %c0_34, %c0_35], %74 {strides = array<i32>} : memref<2x128x128xf32, #tpu.memory_space<vmem>>, vector<1x128x128xf32>,
    %c0_i32_36 = arith.constant 0 : i32
    %75 = arith.cmpi eq, %arg1, %c0_i32_36 : i32
    %76 = arith.extui %75 : i1 to i32
    %c0_i32_37 = arith.constant 0 : i32
    %77 = arith.cmpi ne, %76, %c0_i32_37 : i32
    scf.if %77 {
      %c0_38 = arith.constant 0 : index
      %c0_39 = arith.constant 0 : index
      %c0_40 = arith.constant 0 : index
      %78 = vector.load %arg10[%c0_38, %c0_39, %c0_40] : memref<2x128x128xf32, #tpu.memory_space<vmem>>, vector<1x128x128xf32>
      %79 = vector.shape_cast %78 : vector<1x128x128xf32> to vector<128x128xf32>
      %80 = tpu.transpose %79, [1, 0] : vector<128x128xf32> -> vector<128x128xf32>
      %cst_41 = arith.constant dense<0xFF800000> : vector<128xf32>
      %81 = vector.multi_reduction <maximumf>, %80, %cst_41 [0] : vector<128x128xf32> to vector<128xf32>
      %82 = vector.shape_cast %81 : vector<128xf32> to vector<1x128xf32>
      %c0_42 = arith.constant 0 : index
      %c0_43 = arith.constant 0 : index
      %83 = vector.load %arg9[%c0_42, %c0_43] : memref<2x128xf32, #tpu.memory_space<vmem>>, vector<1x128xf32>
      tpu.vector_store %arg9[%c0_42, %c0_43], %82 {strides = array<i32>} : memref<2x128xf32, #tpu.memory_space<vmem>>, vector<1x128xf32>,
      %c1_44 = arith.constant 1 : index
      %c0_45 = arith.constant 0 : index
      %c0_46 = arith.constant 0 : index
      %84 = vector.load %arg10[%c1_44, %c0_45, %c0_46] : memref<2x128x128xf32, #tpu.memory_space<vmem>>, vector<1x128x128xf32>
      %85 = vector.shape_cast %84 : vector<1x128x128xf32> to vector<128x128xf32>
      %86 = tpu.transpose %85, [1, 0] : vector<128x128xf32> -> vector<128x128xf32>
      %cst_47 = arith.constant dense<0xFF800000> : vector<128xf32>
      %87 = vector.multi_reduction <maximumf>, %86, %cst_47 [0] : vector<128x128xf32> to vector<128xf32>
      %88 = vector.shape_cast %87 : vector<128xf32> to vector<1x128xf32>
      %c1_48 = arith.constant 1 : index
      %c0_49 = arith.constant 0 : index
      %89 = vector.load %arg9[%c1_48, %c0_49] : memref<2x128xf32, #tpu.memory_space<vmem>>, vector<1x128xf32>
      tpu.vector_store %arg9[%c1_48, %c0_49], %88 {strides = array<i32>} : memref<2x128xf32, #tpu.memory_space<vmem>>, vector<1x128xf32>,
    } else {
    }
    return
  }
  func.func @transform_0(%arg0: i32, %arg1: i32) -> (i32, i32, i32) {
    %c0_i32 = arith.constant 0 : i32
    %c0_i32_0 = arith.constant 0 : i32
    return %arg0, %c0_i32, %arg1 : i32, i32, i32
  }
  func.func @transform_1(%arg0: i32, %arg1: i32) -> (i32, i32) {
    %c0_i32 = arith.constant 0 : i32
    %c0_i32_0 = arith.constant 0 : i32
    %c0_i32_1 = arith.constant 0 : i32
    return %c0_i32, %c0_i32_0 : i32, i32
  }
  func.func @transform_2(%arg0: i32, %arg1: i32) -> (i32, i32) {
    %c0_i32 = arith.constant 0 : i32
    %c0_i32_0 = arith.constant 0 : i32
    %c0_i32_1 = arith.constant 0 : i32
    return %c0_i32, %c0_i32_0 : i32, i32
  }
  func.func @transform_3(%arg0: i32, %arg1: i32) -> (i32, i32) {
    %c0_i32 = arith.constant 0 : i32
    %c0_i32_0 = arith.constant 0 : i32
    %c0_i32_1 = arith.constant 0 : i32
    return %c0_i32, %c0_i32_0 : i32, i32
  }
  func.func @transform_4(%arg0: i32, %arg1: i32) -> (i32, i32) {
    %c0_i32 = arith.constant 0 : i32
    %c0_i32_0 = arith.constant 0 : i32
    %c0_i32_1 = arith.constant 0 : i32
    return %c0_i32, %c0_i32_0 : i32, i32
  }
  func.func @transform_5(%arg0: i32, %arg1: i32) -> (i32, i32) {
    %c0_i32 = arith.constant 0 : i32
    %c0_i32_0 = arith.constant 0 : i32
    %c0_i32_1 = arith.constant 0 : i32
    return %c0_i32, %c0_i32_0 : i32, i32
  }
  func.func @transform_6(%arg0: i32, %arg1: i32) -> (i32, i32) {
    %c0_i32 = arith.constant 0 : i32
    %c0_i32_0 = arith.constant 0 : i32
    %c0_i32_1 = arith.constant 0 : i32
    return %c0_i32, %c0_i32_0 : i32, i32
  }
  func.func @transform_7(%arg0: i32, %arg1: i32) -> (i32, i32) {
    %c0_i32 = arith.constant 0 : i32
    %c0_i32_0 = arith.constant 0 : i32
    return %arg0, %c0_i32 : i32, i32
  }
}

</mosaic_0001>

<bundles_post_ra>
// kernel: tpu_custom_call.1
= control target key start
LH: loop header
LB: loop body
LE: loop exit
PB: predicated region body
PF: predicated region fallthrough
CT: control target
= control target key end

     0   :  { %v1599_v2 = vmov 1   ;;  %v1600_v7 = vmov 0   ;;  %s2014_s0 = inlined_call_operand.vmem [shape: bf16[2,2,128], index: 0, kind: input, shape index: {}]   ;;  %s2015_s1 = inlined_call_operand.vmem [shape: f32[64,2], index: 1, kind: input, shape index: {}]   ;;  %s2016_s2 = inlined_call_operand.vmem [shape: f32[64,1], index: 2, kind: input, shape index: {}]   ;;  %s2017_s3 = inlined_call_operand.vmem [shape: bf16[128,64], index: 3, kind: input, shape index: {}]   ;;  %s2018_s4 = inlined_call_operand.vmem [shape: f32[128,1], index: 4, kind: input, shape index: {}]   ;;  %s2019_s5 = inlined_call_operand.vmem [shape: bf16[128,128], index: 5, kind: input, shape index: {}]   ;;  %s2020_s6 = inlined_call_operand.vmem [shape: f32[128,1], index: 6, kind: input, shape index: {}]   ;;  %s2021_s7 = inlined_call_operand.hbm [shape: f32[2,128], index: 7, kind: output, shape index: {}]  }
   0x1   :  { %v338_v0 = vld [vmem:[%s2015_s1 + $0x10] sm:$0xff]  ;;  %v336_v1 = vld [vmem:[%s2015_s1] sm:$0xff]  ;;  %1550 = vset.pattern.permute.xlu0 %v1599_v2  ;;  %1548 = vset.pattern.permute.xlu1 %v1599_v2  ;;  %v337_v4 = vld [vmem:[%s2015_s1 + $0x8] sm:$0xff] }
   0x2   :  { %393 = vperm.xlu0 %1550, %v338_v0   ;;  %385 = vperm.xlu1 %1548, %v336_v1   ;;  %v340_v3 = vld [vmem:[%s2015_s1 + $0x20] sm:$0xff]  ;;  %v342_v5 = vld [vmem:[%s2015_s1 + $0x30] sm:$0xff]  ;;  %v97_v6 = vld [vmem:[%s2016_s2 + $0x8] sm:$0xff] }
   0x3   :  { %v339_v8 = vld [vmem:[%s2015_s1 + $0x18] sm:$0xff]  ;;  %v96_v9 = vld [vmem:[%s2016_s2] sm:$0xff]  ;;  %v98_v10 = vld [vmem:[%s2016_s2 + $0x10] sm:$0xff] }
   0x6   :  { %401 = vperm.xlu0 %1550, %v340_v3   ;;  %389 = vperm.xlu1 %1548, %v337_v4  }
   0xa   :  { %409 = vperm.xlu0 %1550, %v342_v5   ;;  %1549 = vset.pattern.permute.xlu1 %v1600_v7 }
   0xb   :  { %111 = vperm.xlu1 %1549, %v97_v6  }
   0xe   :  { %1555 = vset.pattern.permute.xlu0 %v1600_v7 }
   0xf   :  { %346 = vperm.xlu0 %1555, %v336_v1   ;;  %361 = vperm.xlu1 %1549, %v339_v8  }
  0x13   :  { %351 = vperm.xlu0 %1555, %v337_v4   ;;  %1551 = vset.pattern.permute.xlu1 %v1599_v2 }
  0x14   :  { %397 = vperm.xlu1 %1551, %v339_v8  }
  0x17   :  { %106 = vperm.xlu0 %1555, %v96_v9  }
  0x18   :  { %1552 = vset.pattern.permute.xlu1 %v1600_v7 }
  0x19   :  { %116 = vperm.xlu1 %1552, %v98_v10  }
  0x1b   :  { %356 = vperm.xlu0 %1555, %v338_v0  }
  0x1c   :  { %12 = vsyncpa [#allocation4], 0  ;;  %v99_v11 = vld [vmem:[%s2016_s2 + $0x18] sm:$0xff]  ;;  %v341_v12 = vld [vmem:[%s2015_s1 + $0x28] sm:$0xff]  ;;  %vm510_vm0 = vcmask 523264   ;;  %v418_v53 = vlaneseq }
  0x1d   :  { %366 = vperm.xlu1 %1552, %v340_v3   ;;  %v101_v13 = vld [vmem:[%s2016_s2 + $0x28] sm:$0xff]  ;;  %v103_v14 = vld [vmem:[%s2016_s2 + $0x38] sm:$0xff]  ;;  %v100_v15 = vld [vmem:[%s2016_s2 + $0x20] sm:$0xff] }
  0x1e   :  { %v146_v16 = vld [vmem:[%s2018_s4 + $0x10] sm:$0xff]  ;;  %v148_v17 = vld [vmem:[%s2018_s4 + $0x20] sm:$0xff]  ;;  %v343_v18 = vld [vmem:[%s2015_s1 + $0x38] sm:$0xff]  ;;  %v1806_v56 = vshrl.u32 %v418_v53, 7 }
  0x1f   :  { %121 = vperm.xlu0 %1555, %v99_v11   ;;  %v150_v19 = vld [vmem:[%s2018_s4 + $0x30] sm:$0xff]  ;;  %v152_v20 = vld [vmem:[%s2018_s4 + $0x40] sm:$0xff]  ;;  %v145_v26 = vld [vmem:[%s2018_s4 + $0x8] sm:$0xff] }
  0x20   :  { %v154_v21 = vld [vmem:[%s2018_s4 + $0x50] sm:$0xff]  ;;  %v156_v23 = vld [vmem:[%s2018_s4 + $0x60] sm:$0xff]  ;;  %v147_v29 = vld [vmem:[%s2018_s4 + $0x18] sm:$0xff]  ;;  %v420_v59 = vsub.s32 0, %v1806_v56  ;;  %v432_v62 = vsub.s32 1, %v1806_v56 }
  0x21   :  { %371 = vperm.xlu1 %1552, %v341_v12   ;;  %v102_v22 = vld [vmem:[%s2016_s2 + $0x30] sm:$0xff]  ;;  %v144_v24 = vld [vmem:[%s2018_s4] sm:$0xff]  ;;  %v149_v31 = vld [vmem:[%s2018_s4 + $0x28] sm:$0xff] }
  0x22   :  { %v158_v25 = vld [vmem:[%s2018_s4 + $0x70] sm:$0xff]  ;;  %v240_v27 = vld [vmem:[%s2020_s6] sm:$0xff]  ;;  %v151_v33 = vld [vmem:[%s2018_s4 + $0x38] sm:$0xff] }
  0x23   :  { %131 = vperm.xlu0 %1555, %v101_v13   ;;  %v1728_v28 = vld [vmem:[%s2017_s3] sm:$0xff]   ;;  %v242_v30 = vld [vmem:[%s2020_s6 + $0x10] sm:$0xff]  ;;  %v153_v35 = vld [vmem:[%s2018_s4 + $0x48] sm:$0xff] }
  0x24   :  { %1425 = vmatprep.mubr.msk.bf16.mxu0 %vm510_vm0, %v1728_v28  ;;  %v244_v32 = vld [vmem:[%s2020_s6 + $0x20] sm:$0xff]  ;;  %v246_v34 = vld [vmem:[%s2020_s6 + $0x30] sm:$0xff]  ;;  %v155_v37 = vld [vmem:[%s2018_s4 + $0x58] sm:$0xff] }
  0x25   :  { %1553 = vset.pattern.permute.xlu1 %v1599_v2  ;;  %v248_v36 = vld [vmem:[%s2020_s6 + $0x40] sm:$0xff]  ;;  %v250_v38 = vld [vmem:[%s2020_s6 + $0x50] sm:$0xff]  ;;  %v157_v39 = vld [vmem:[%s2018_s4 + $0x68] sm:$0xff] }
  0x26   :  { %405 = vperm.xlu1 %1553, %v341_v12   ;;  %v252_v40 = vld [vmem:[%s2020_s6 + $0x60] sm:$0xff]  ;;  %v159_v41 = vld [vmem:[%s2018_s4 + $0x78] sm:$0xff]  ;;  %v254_v42 = vld [vmem:[%s2020_s6 + $0x70] sm:$0xff] }
  0x27   :  { %141 = vperm.xlu0 %1555, %v103_v14   ;;  %v241_v43 = vld [vmem:[%s2020_s6 + $0x8] sm:$0xff]  ;;  %v243_v44 = vld [vmem:[%s2020_s6 + $0x18] sm:$0xff]  ;;  %v416_v57 = vld [vmem:[%s2014_s0] sm:$0x1] }
  0x28   :  { %v245_v45 = vld [vmem:[%s2020_s6 + $0x28] sm:$0xff]  ;;  %v247_v46 = vld [vmem:[%s2020_s6 + $0x38] sm:$0xff]  ;;  %v417_v61 = vunpack.c.l.bf16 %v416_v57 }
  0x29   :  { %v249_v47 = vld [vmem:[%s2020_s6 + $0x48] sm:$0xff]  ;;  %v251_v48 = vld [vmem:[%s2020_s6 + $0x58] sm:$0xff] }
  0x2a   :  { %1554 = vset.pattern.permute.xlu1 %v1600_v7  ;;  %v253_v49 = vld [vmem:[%s2020_s6 + $0x68] sm:$0xff]  ;;  %v255_v50 = vld [vmem:[%s2020_s6 + $0x78] sm:$0xff]  ;;  %v1817_v63 = vrot.slane %v417_v61, %v420_v59  ;;  %v1821_v3 = vrot.slane %v417_v61, %v432_v62 }
  0x2b   :  { %126 = vperm.xlu1 %1554, %v100_v15   ;;  %172 = vperm.xlu0 %1555, %v146_v16  }
  0x2f   :  { %376 = vperm.xlu1 %1554, %v342_v5   ;;  %182 = vperm.xlu0 %1555, %v148_v17  }
  0x33   :  { %381 = vperm.xlu1 %1554, %v343_v18   ;;  %192 = vperm.xlu0 %1555, %v150_v19  }
  0x37   :  { %1556 = vset.pattern.permute.xlu1 %v1599_v2  ;;  %202 = vperm.xlu0 %1555, %v152_v20  }
  0x38   :  { %413 = vperm.xlu1 %1556, %v343_v18  }
  0x3b   :  { %212 = vperm.xlu0 %1555, %v154_v21  }
  0x3c   :  { %1557 = vset.pattern.permute.xlu1 %v1600_v7 }
  0x3d   :  { %136 = vperm.xlu1 %1557, %v102_v22  }
  0x3f   :  { %222 = vperm.xlu0 %1555, %v156_v23  }
  0x41   :  { %162 = vperm.xlu1 %1557, %v144_v24  }
  0x43   :  { %232 = vperm.xlu0 %1555, %v158_v25  }
  0x45   :  { %167 = vperm.xlu1 %1557, %v145_v26  }
  0x47   :  { %258 = vperm.xlu0 %1555, %v240_v27  }
  0x49   :  { %177 = vperm.xlu1 %1557, %v147_v29  }
  0x4b   :  { %268 = vperm.xlu0 %1555, %v242_v30  }
  0x4d   :  { %187 = vperm.xlu1 %1557, %v149_v31  }
  0x4f   :  { %278 = vperm.xlu0 %1555, %v244_v32  }
  0x51   :  { %197 = vperm.xlu1 %1557, %v151_v33  }
  0x53   :  { %288 = vperm.xlu0 %1555, %v246_v34  }
  0x55   :  { %207 = vperm.xlu1 %1557, %v153_v35  }
  0x57   :  { %298 = vperm.xlu0 %1555, %v248_v36  }
  0x59   :  { %217 = vperm.xlu1 %1557, %v155_v37  }
  0x5b   :  { %308 = vperm.xlu0 %1555, %v250_v38  }
  0x5d   :  { %227 = vperm.xlu1 %1557, %v157_v39  }
  0x5f   :  { %318 = vperm.xlu0 %1555, %v252_v40  }
  0x61   :  { %237 = vperm.xlu1 %1557, %v159_v41  }
  0x63   :  { %328 = vperm.xlu0 %1555, %v254_v42  }
  0x65   :  { %263 = vperm.xlu1 %1557, %v241_v43  }
  0x69   :  { %273 = vperm.xlu1 %1557, %v243_v44  }
  0x6d   :  { %283 = vperm.xlu1 %1557, %v245_v45   ;;  %v1352_v45 = vld [vmem:[%s2014_s0 + $0x1] sm:$0x1] }
  0x71   :  { %293 = vperm.xlu1 %1557, %v247_v46  }
  0x75   :  { %303 = vperm.xlu1 %1557, %v249_v47  }
  0x79   :  { %313 = vperm.xlu1 %1557, %v251_v48  }
  0x7d   :  { %323 = vperm.xlu1 %1557, %v253_v49   ;;  %v851_v49 = vunpack.c.l.bf16 %v1352_v45 }
  0x7f   :  { %v855_v56 = vrot.slane %v851_v49, %v420_v59  ;;  %v867_v57 = vrot.slane %v851_v49, %v432_v62 }
  0x81   :  { %v1798_v51 = vpop.permute.xlu1 %385  ;;  %333 = vperm.xlu1 %1557, %v255_v50   ;;  %v1800_v52 = vpop.permute.xlu0 %393 }
  0x82   :  { %v434_v6 = vmul.f32 %v1821_v3, %v1798_v51  ;;  %v436_v20 = vmul.f32 %v1821_v3, %v1800_v52 }
  0x85   :  { %v1802_v54 = vpop.permute.xlu1 %389  ;;  %v1804_v55 = vpop.permute.xlu0 %401 }
  0x86   :  { %v435_v7 = vmul.f32 %v1821_v3, %v1802_v54  ;;  %v438_v39 = vmul.f32 %v1821_v3, %v1804_v55 }
  0x89   :  { %v1811_v58 = vpop.permute.xlu0 %409 }
  0x8a   :  { %v1814_v60 = vpop.permute.xlu1 %111 }
  0x8e   :  { %v347_v0 = vpop.permute.xlu0 %346  ;;  %v1819_v1 = vpop.permute.xlu1 %361 }
  0x8f   :  { %v422_v4 = vmul.f32 %v1817_v63, %v347_v0  ;;  %v425_v21 = vmul.f32 %v1817_v63, %v1819_v1 }
  0x91   :  { %v442_v11 = vadd.f32 %v434_v6, %v422_v4  ;;  %v856_v6 = vmul.f32 %v855_v56, %v347_v0  ;;  %v440_v0 = vmul.f32 %v1821_v3, %v1811_v58 }
  0x92   :  { %v352_v5 = vpop.permute.xlu0 %351 }
  0x93   :  { %v423_v8 = vmul.f32 %v1817_v63, %v352_v5  ;;  %v398_v9 = vpop.permute.xlu1 %397  ;;  %v857_v4 = vmul.f32 %v855_v56, %v352_v5 }
  0x94   :  { %v437_v16 = vmul.f32 %v1821_v3, %v398_v9 }
  0x95   :  { %v443_v10 = vadd.f32 %v435_v7, %v423_v8  ;;  %v869_v7 = vmul.f32 %v867_v57, %v1802_v54  ;;  %v868_v8 = vmul.f32 %v867_v57, %v1798_v51  ;;  %v859_v54 = vmul.f32 %v855_v56, %v1819_v1 }
  0x96   :  { %v1829_v12 = vpop.permute.xlu0 %106  ;;  %v445_v26 = vadd.f32 %v437_v16, %v425_v21 }
  0x97   :  { %v450_v13 = vadd.f32 %v442_v11, %v1829_v12  ;;  %v451_v14 = vadd.f32 %v443_v10, %v1814_v60  ;;  %v870_v11 = vmul.f32 %v867_v57, %v1800_v52 }
  0x98   :  { %v1833_v15 = vpop.permute.xlu1 %116 }
  0x99   :  { %v458_v17 = vmax.f32 %v450_v13, 0.0  ;;  %v459_v18 = vmax.f32 %v451_v14, 0.0  ;;  %v877_v13 = vadd.f32 %v869_v7, %v857_v4  ;;  %v1564_v4 = vld [vmem:[%s2017_s3 + $0x28] sm:$0xff]   ;;  %v1566_v7 = vld [vmem:[%s2017_s3 + $0x38] sm:$0xff]  }
  0x9a   :  { %v357_v19 = vpop.permute.xlu0 %356 }
  0x9b   :  { %v424_v22 = vmul.f32 %v1817_v63, %v357_v19  ;;  %v466_v23 = vpack.c.bf16 %v459_v18, %v458_v17  ;;  %v858_v10 = vmul.f32 %v855_v56, %v357_v19  ;;  %v871_v17 = vmul.f32 %v867_v57, %v398_v9 }
  0x9c   :  { %v367_v24 = vpop.permute.xlu1 %366  ;;  %v876_v18 = vadd.f32 %v868_v8, %v856_v6  ;;  %v885_v52 = vadd.f32 %v877_v13, %v1814_v60  ;;  %v1565_v6 = vld [vmem:[%s2017_s3 + $0x30] sm:$0xff]   ;;  %v1567_v8 = vld [vmem:[%s2019_s5] sm:$0xff]  }
  0x9d   :  { %v444_v25 = vadd.f32 %v436_v20, %v424_v22  ;;  %1417 = vmatprep.subr.bf16.mxu0 %v466_v23  ;;  %v426_v35 = vmul.f32 %v1817_v63, %v367_v24  ;;  %v878_v5 = vadd.f32 %v870_v11, %v858_v10  ;;  %v879_v9 = vadd.f32 %v871_v17, %v859_v54 }
  0x9e   :  { %1418 = vmatpush3.bf16.msra.mxu0 %v466_v23  ;;  %v122_v27 = vpop.permute.xlu0 %121  ;;  %v884_v51 = vadd.f32 %v876_v18, %v1829_v12  ;;  %v893_v60 = vmax.f32 %v885_v52, 0.0  ;;  %1457 = vmatprep.mubr.bf16.mxu1 %v1567_v8 }
  0x9f   :  { %v452_v29 = vadd.f32 %v444_v25, %v1833_v15  ;;  %v453_v30 = vadd.f32 %v445_v26, %v122_v27  ;;  %v446_v42 = vadd.f32 %v438_v39, %v426_v35  ;;  %v860_v26 = vmul.f32 %v855_v56, %v367_v24 }
  0xa0   :  { %v372_v31 = vpop.permute.xlu1 %371  ;;  %v886_v1 = vadd.f32 %v878_v5, %v1833_v15  ;;  %v1560_v15 = vld [vmem:[%s2017_s3 + $0x8] sm:$0xff]  }
  0xa1   :  { %v461_v32 = vmax.f32 %v453_v30, 0.0  ;;  %v460_v33 = vmax.f32 %v452_v29, 0.0  ;;  %v427_v37 = vmul.f32 %v1817_v63, %v372_v31  ;;  %v861_v29 = vmul.f32 %v855_v56, %v372_v31 }
  0xa2   :  { %v132_v41 = vpop.permute.xlu0 %131 }
  0xa3   :  { %v467_v34 = vpack.c.bf16 %v461_v32, %v460_v33  ;;  %v887_v32 = vadd.f32 %v879_v9, %v122_v27  ;;  %v1561_v27 = vld [vmem:[%s2017_s3 + $0x10] sm:$0xff]  }
  0xa5   :  { %v406_v36 = vpop.permute.xlu1 %405  ;;  %1419 = vmatprep.subr.bf16.mxu0 %v467_v34 }
  0xa6   :  { %v439_v38 = vmul.f32 %v1821_v3, %v406_v36  ;;  %1420 = vmatpush3.bf16.msra.mxu0 %v467_v34  ;;  %v873_v20 = vmul.f32 %v867_v57, %v406_v36  ;;  %v142_v21 = vpop.permute.xlu0 %141 }
  0xa8   :  { %v447_v40 = vadd.f32 %v439_v38, %v427_v37  ;;  %v881_v33 = vadd.f32 %v873_v20, %v861_v29 }
  0xaa   :  { %v455_v43 = vadd.f32 %v447_v40, %v132_v41  ;;  %v127_v44 = vpop.permute.xlu1 %126  ;;  %v874_v40 = vmul.f32 %v867_v57, %v1811_v58  ;;  %v889_v24 = vadd.f32 %v881_v33, %v132_v41  ;;  %v1908_v11 = vpop.permute.xlu0 %172 }
  0xab   :  { %v454_v46 = vadd.f32 %v446_v42, %v127_v44  ;;  %v895_v42 = vmax.f32 %v887_v32, 0.0 }
  0xac   :  { %v463_v47 = vmax.f32 %v455_v43, 0.0  ;;  %v897_v41 = vmax.f32 %v889_v24, 0.0 }
  0xad   :  { %v462_v48 = vmax.f32 %v454_v46, 0.0 }
  0xae   :  { %v377_v50 = vpop.permute.xlu1 %376 }
  0xaf   :  { %v468_v53 = vpack.c.bf16 %v463_v47, %v462_v48  ;;  %v428_v14 = vmul.f32 %v1817_v63, %v377_v50  ;;  %v862_v37 = vmul.f32 %v855_v56, %v377_v50 }
  0xb1   :  { %1421 = vmatprep.subr.bf16.mxu0 %v468_v53  ;;  %v448_v22 = vadd.f32 %v440_v0, %v428_v14  ;;  %v882_v46 = vadd.f32 %v874_v40, %v862_v37  ;;  %v1912_v14 = vpop.permute.xlu0 %182 }
  0xb2   :  { %v382_v61 = vpop.permute.xlu1 %381  ;;  %1422 = vmatpush3.bf16.msra.mxu0 %v468_v53  ;;  %v1562_v53 = vld [vmem:[%s2017_s3 + $0x18] sm:$0xff]  }
  0xb3   :  { %v429_v59 = vmul.f32 %v1817_v63, %v382_v61  ;;  %v872_v63 = vmul.f32 %v867_v57, %v1804_v55  ;;  %v863_v38 = vmul.f32 %v855_v56, %v382_v61  ;;  %v894_v55 = vmax.f32 %v886_v1, 0.0 }
  0xb5   :  { %v880_v36 = vadd.f32 %v872_v63, %v860_v26  ;;  %v901_v47 = vpack.c.bf16 %v895_v42, %v894_v55  ;;  %v1916_v17 = vpop.permute.xlu0 %192 }
  0xb7   :  { %v414_v16 = vpop.permute.xlu1 %413  ;;  %v888_v31 = vadd.f32 %v880_v36, %v127_v44 }
  0xb8   :  { %v441_v62 = vmul.f32 %v1821_v3, %v414_v16  ;;  %v892_v3 = vmax.f32 %v884_v51, 0.0  ;;  %v875_v34 = vmul.f32 %v867_v57, %v414_v16  ;;  %v1563_v57 = vld [vmem:[%s2017_s3 + $0x20] sm:$0xff]  }
  0xb9   :  { %v896_v58 = vmax.f32 %v888_v31, 0.0 }
  0xba   :  { %v449_v19 = vadd.f32 %v441_v62, %v429_v59  ;;  %v883_v43 = vadd.f32 %v875_v34, %v863_v38  ;;  %v900_v45 = vpack.c.bf16 %v893_v60, %v892_v3 }
  0xbb   :  { %v902_v50 = vpack.c.bf16 %v897_v41, %v896_v58 }
  0xbc   :  { %v457_v23 = vadd.f32 %v449_v19, %v142_v21  ;;  %v137_v25 = vpop.permute.xlu1 %136  ;;  %v891_v48 = vadd.f32 %v883_v43, %v142_v21 }
  0xbd   :  { %v456_v30 = vadd.f32 %v448_v22, %v137_v25  ;;  %v890_v49 = vadd.f32 %v882_v46, %v137_v25  ;;  %v1924_v22 = vpop.permute.xlu0 %202 }
  0xbe   :  { %v465_v12 = vmax.f32 %v457_v23, 0.0  ;;  %v899_v56 = vmax.f32 %v891_v48, 0.0 }
  0xbf   :  { %v464_v35 = vmax.f32 %v456_v30, 0.0  ;;  %v898_v44 = vmax.f32 %v890_v49, 0.0 }
  0xc1   :  { %v469_v39 = vpack.c.bf16 %v465_v12, %v464_v35  ;;  %v903_v61 = vpack.c.bf16 %v899_v56, %v898_v44  ;;  %v1931_v34 = vpop.permute.xlu0 %212 }
  0xc3   :  { %1423 = vmatprep.subr.bf16.mxu0 %v469_v39 }
  0xc4   :  { %1424 = vmatpush3.bf16.msra.mxu0 %v469_v39 }
  0xc5   :  { %1473 = vmatprep.subr.bf16.mxu0 %v900_v45  ;;  %v1937_v43 = vpop.permute.xlu0 %222 }
  0xc7   :  { %1426 = vmatmul.mubr.msk.bf16.vlgmr.msra.gmra.mrb[0].mxu0 %vm510_vm0, %v1560_v15 }
  0xc8   :  { %1474 = vmatpush3.bf16.msra.mxu0 %v900_v45  ;;  %1429 = vmatprep.mubr.msk.bf16.mxu0 %vm510_vm0, %v1561_v27 }
  0xc9   :  { %1475 = vmatprep.subr.bf16.mxu0 %v901_v47 }
  0xcc   :  { %1476 = vmatpush3.bf16.msra.mxu0 %v901_v47 }
  0xcd   :  { %1477 = vmatprep.subr.bf16.mxu0 %v902_v50 }
  0xcf   :  { %1430 = vmatmul.mubr.msk.bf16.gmra.mrb[4].mxu0 %vm510_vm0, %v1562_v53 }
  0xd0   :  { %1478 = vmatpush3.bf16.msra.mxu0 %v902_v50  ;;  %1433 = vmatprep.mubr.msk.bf16.mxu0 %vm510_vm0, %v1563_v57 }
  0xd1   :  { %1479 = vmatprep.subr.bf16.mxu0 %v903_v61 }
  0xd4   :  { %1480 = vmatpush3.bf16.msra.mxu0 %v903_v61 }
  0xd7   :  { %1434 = vmatmul.mubr.msk.bf16.gmra.mrb[8].mxu0 %vm510_vm0, %v1564_v4 }
  0xd8   :  { %1437 = vmatprep.mubr.msk.bf16.mxu0 %vm510_vm0, %v1565_v6 }
  0xdf   :  { %1438 = vmatmul.mubr.msk.bf16.gmra.mrb[12].mxu0 %vm510_vm0, %v1566_v7 }
  0xe0   :  { %1481 = vmatprep.mubr.msk.bf16.mxu0 %vm510_vm0, %v1728_v28  ;;  %v1904_v28 = vpop.permute.xlu1 %162 }
  0xe4   :  { %v1906_v10 = vpop.permute.xlu1 %167 }
  0xe7   :  { %1482 = vmatmul.mubr.msk.bf16.vlgmr.msra.gmra.mrb[16].mxu0 %vm510_vm0, %v1560_v15 }
  0xe8   :  { %1485 = vmatprep.mubr.msk.bf16.mxu0 %vm510_vm0, %v1561_v27  ;;  %v1910_v13 = vpop.permute.xlu1 %177 }
  0xec   :  { %v1914_v16 = vpop.permute.xlu1 %187 }
  0xef   :  { %1486 = vmatmul.mubr.msk.bf16.gmra.mrb[20].mxu0 %vm510_vm0, %v1562_v53  ;;  %v1944_v53 = vpop.permute.xlu0 %232 }
  0xf0   :  { %1489 = vmatprep.mubr.msk.bf16.mxu0 %vm510_vm0, %v1563_v57  ;;  %v1919_v0 = vpop.permute.xlu1 %197 }
  0xf4   :  { %v1926_v63 = vpop.permute.xlu1 %207 }
  0xf7   :  { %1490 = vmatmul.mubr.msk.bf16.gmra.mrb[24].mxu0 %vm510_vm0, %v1564_v4 }
  0xf8   :  { %1493 = vmatprep.mubr.msk.bf16.mxu0 %vm510_vm0, %v1565_v6  ;;  %v1934_v37 = vpop.permute.xlu1 %217 }
  0xfc   :  { %v1941_v47 = vpop.permute.xlu1 %227 }
  0xff   :  { %1494 = vmatmul.mubr.msk.bf16.gmra.mrb[28].mxu0 %vm510_vm0, %v1566_v7 }
 0x100   :  { %1513 = vmatprep.mubr.bf16.mxu0 %v1567_v8  ;;  %v1947_v6 = vpop.permute.xlu1 %237 }
 0x19a   :  { %v1427_v18 = vpop.f32.mrb[0].mxu0 }
 0x19b   :  { %v578_v59 = vadd.f32 %v1427_v18, %v1908_v11  ;;  %v569_v62 = vpop.f32.mrb[1].mxu0 }
 0x19c   :  { %v570_v54 = vadd.f32 %v569_v62, %v1904_v28  ;;  %v1428_v51 = vpop.f32.mrb[2].mxu0 }
 0x19d   :  { %v581_v5 = vadd.f32 %v1428_v51, %v1910_v13  ;;  %v572_v19 = vpop.f32.mrb[3].mxu0  ;;  %v634_v20 = vmax.f32 %v578_v59, 0.0 }
 0x19e   :  { %v573_v52 = vadd.f32 %v572_v19, %v1906_v10  ;;  %v632_v9 = vmax.f32 %v570_v54, 0.0 }
 0x19f   :  { %v635_v21 = vmax.f32 %v581_v5, 0.0 }
 0x1a0   :  { %v633_v23 = vmax.f32 %v573_v52, 0.0 }
 0x1a1   :  { %v649_v25 = vpack.c.bf16 %v635_v21, %v634_v20 }
 0x1a2   :  { %v1431_v26 = vpop.f32.mrb[4].mxu0  ;;  %v648_v29 = vpack.c.bf16 %v633_v23, %v632_v9 }
 0x1a3   :  { %v594_v30 = vadd.f32 %v1431_v26, %v1916_v17  ;;  %v585_v3 = vpop.f32.mrb[5].mxu0 }
 0x1a4   :  { %v586_v1 = vadd.f32 %v585_v3, %v1912_v14  ;;  %v1432_v32 = vpop.f32.mrb[6].mxu0  ;;  %1441 = vmatprep.subr.bf16.mxu1 %v648_v29 }
 0x1a5   :  { %v597_v12 = vadd.f32 %v1432_v32, %v1919_v0  ;;  %v588_v33 = vpop.f32.mrb[7].mxu0  ;;  %1442 = vmatpush3.bf16.msra.mxu1 %v648_v29  ;;  %v638_v60 = vmax.f32 %v594_v30, 0.0 }
 0x1a6   :  { %v589_v35 = vadd.f32 %v588_v33, %v1914_v16  ;;  %1443 = vmatprep.subr.bf16.mxu1 %v649_v25  ;;  %v636_v38 = vmax.f32 %v586_v1, 0.0 }
 0x1a7   :  { %v639_v36 = vmax.f32 %v597_v12, 0.0 }
 0x1a8   :  { %v637_v39 = vmax.f32 %v589_v35, 0.0 }
 0x1a9   :  { %v651_v40 = vpack.c.bf16 %v639_v36, %v638_v60  ;;  %1444 = vmatpush3.bf16.msra.mxu1 %v649_v25 }
 0x1aa   :  { %v650_v42 = vpack.c.bf16 %v637_v39, %v636_v38  ;;  %v1435_v55 = vpop.f32.mrb[8].mxu0 }
 0x1ab   :  { %v610_v24 = vadd.f32 %v1435_v55, %v1931_v34  ;;  %v601_v31 = vpop.f32.mrb[9].mxu0 }
 0x1ac   :  { %v602_v45 = vadd.f32 %v601_v31, %v1924_v22  ;;  %v1436_v15 = vpop.f32.mrb[10].mxu0  ;;  %1445 = vmatprep.subr.bf16.mxu1 %v650_v42 }
 0x1ad   :  { %v613_v27 = vadd.f32 %v1436_v15, %v1934_v37  ;;  %v604_v46 = vpop.f32.mrb[11].mxu0  ;;  %1446 = vmatpush3.bf16.msra.mxu1 %v650_v42  ;;  %v642_v48 = vmax.f32 %v610_v24, 0.0 }
 0x1ae   :  { %v605_v58 = vadd.f32 %v604_v46, %v1926_v63  ;;  %1447 = vmatprep.subr.bf16.mxu1 %v651_v40  ;;  %v640_v41 = vmax.f32 %v602_v45, 0.0  ;;  %v1975_v45 = vld [vmem:[%s2019_s5 + $0x18] sm:$0xff]  }
 0x1af   :  { %v643_v49 = vmax.f32 %v613_v27, 0.0 }
 0x1b0   :  { %v641_v44 = vmax.f32 %v605_v58, 0.0  ;;  %v1571_v58 = vld [vmem:[%s2019_s5 + $0x20] sm:$0xff]  }
 0x1b1   :  { %v653_v50 = vpack.c.bf16 %v643_v49, %v642_v48  ;;  %1448 = vmatpush3.bf16.msra.mxu1 %v651_v40 }
 0x1b2   :  { %v652_v56 = vpack.c.bf16 %v641_v44, %v640_v41  ;;  %v1439_v57 = vpop.f32.mrb[12].mxu0 }
 0x1b3   :  { %v626_v61 = vadd.f32 %v1439_v57, %v1944_v53  ;;  %v617_v4 = vpop.f32.mrb[13].mxu0 }
 0x1b4   :  { %v618_v7 = vadd.f32 %v617_v4, %v1937_v43  ;;  %v1440_v8 = vpop.f32.mrb[14].mxu0  ;;  %1449 = vmatprep.subr.bf16.mxu1 %v652_v56 }
 0x1b5   :  { %v629_v18 = vadd.f32 %v1440_v8, %v1947_v6  ;;  %v620_v59 = vpop.f32.mrb[15].mxu0  ;;  %1450 = vmatpush3.bf16.msra.mxu1 %v652_v56  ;;  %v646_v54 = vmax.f32 %v626_v61, 0.0 }
 0x1b6   :  { %v621_v62 = vadd.f32 %v620_v59, %v1941_v47  ;;  %1451 = vmatprep.subr.bf16.mxu1 %v653_v50  ;;  %v644_v5 = vmax.f32 %v618_v7, 0.0 }
 0x1b7   :  { %v647_v51 = vmax.f32 %v629_v18, 0.0  ;;  %v1573_v18 = vld [vmem:[%s2019_s5 + $0x30] sm:$0xff]  }
 0x1b8   :  { %v645_v19 = vmax.f32 %v621_v62, 0.0 }
 0x1b9   :  { %v655_v52 = vpack.c.bf16 %v647_v51, %v646_v54  ;;  %1452 = vmatpush3.bf16.msra.mxu1 %v653_v50 }
 0x1ba   :  { %v654_v20 = vpack.c.bf16 %v645_v19, %v644_v5  ;;  %v1483_v21 = vpop.f32.mrb[16].mxu0 }
 0x1bb   :  { %v947_v9 = vadd.f32 %v1483_v21, %v1908_v11  ;;  %v938_v23 = vpop.f32.mrb[17].mxu0  ;;  %v1959_v11 = vld [vmem:[%s2019_s5 + $0x8] sm:$0xff]  }
 0x1bc   :  { %v939_v25 = vadd.f32 %v938_v23, %v1904_v28  ;;  %1453 = vmatprep.subr.bf16.mxu1 %v654_v20  ;;  %v1484_v26 = vpop.f32.mrb[18].mxu0 }
 0x1bd   :  { %v950_v29 = vadd.f32 %v1484_v26, %v1910_v13  ;;  %1454 = vmatpush3.bf16.msra.mxu1 %v654_v20  ;;  %v941_v30 = vpop.f32.mrb[19].mxu0  ;;  %v1003_v1 = vmax.f32 %v947_v9, 0.0  ;;  %v259_v9 = vpop.permute.xlu0 %258 }
 0x1be   :  { %v942_v3 = vadd.f32 %v941_v30, %v1906_v10  ;;  %1455 = vmatprep.subr.bf16.mxu1 %v655_v52  ;;  %v1001_v12 = vmax.f32 %v939_v25, 0.0  ;;  %v1965_v10 = vld [vmem:[%s2019_s5 + $0x10] sm:$0xff]   ;;  %v264_v30 = vpop.permute.xlu1 %263 }
 0x1bf   :  { %v1004_v32 = vmax.f32 %v950_v29, 0.0 }
 0x1c0   :  { %v1002_v33 = vmax.f32 %v942_v3, 0.0 }
 0x1c1   :  { %v1018_v35 = vpack.c.bf16 %v1004_v32, %v1003_v1  ;;  %1456 = vmatpush3.bf16.msra.mxu1 %v655_v52  ;;  %v269_v32 = vpop.permute.xlu0 %268 }
 0x1c2   :  { %v1017_v28 = vpack.c.bf16 %v1002_v33, %v1001_v12  ;;  %v1487_v60 = vpop.f32.mrb[20].mxu0 }
 0x1c3   :  { %v963_v13 = vadd.f32 %v1487_v60, %v1916_v17  ;;  %v954_v36 = vpop.f32.mrb[21].mxu0 }
 0x1c4   :  { %v955_v38 = vadd.f32 %v954_v36, %v1912_v14  ;;  %1458 = vmatmul.mubr.bf16.vlgmr.msra.gmra.mrb[0].mxu1 %v1959_v11  ;;  %v1488_v39 = vpop.f32.mrb[22].mxu0  ;;  %1497 = vmatprep.subr.bf16.mxu0 %v1017_v28 }
 0x1c5   :  { %v966_v40 = vadd.f32 %v1488_v39, %v1919_v0  ;;  %1529 = vmatprep.subr.bf16.mxu1 %v1017_v28  ;;  %v957_v42 = vpop.f32.mrb[23].mxu0  ;;  %1498 = vmatpush3.bf16.msra.mxu0 %v1017_v28  ;;  %v1007_v17 = vmax.f32 %v963_v13, 0.0  ;;  %v279_v36 = vpop.permute.xlu0 %278 }
 0x1c6   :  { %v958_v55 = vadd.f32 %v957_v42, %v1914_v16  ;;  %1537 = vmatpush3.bf16.msra.mxu1 %v1017_v28  ;;  %1499 = vmatprep.subr.bf16.mxu0 %v1018_v35  ;;  %v1005_v31 = vmax.f32 %v955_v38, 0.0  ;;  %v274_v28 = vpop.permute.xlu1 %273 }
 0x1c7   :  { %v1008_v24 = vmax.f32 %v966_v40, 0.0  ;;  %1530 = vmatprep.subr.bf16.mxu1 %v1018_v35  ;;  %1461 = vmatprep.mubr.bf16.mxu1 %v1965_v10 }
 0x1c8   :  { %v1006_v14 = vmax.f32 %v958_v55, 0.0 }
 0x1c9   :  { %v1020_v0 = vpack.c.bf16 %v1008_v24, %v1007_v17  ;;  %1500 = vmatpush3.bf16.msra.mxu0 %v1018_v35  ;;  %v289_v24 = vpop.permute.xlu0 %288 }
 0x1ca   :  { %v1019_v15 = vpack.c.bf16 %v1006_v14, %v1005_v31  ;;  %1538 = vmatpush3.bf16.msra.mxu1 %v1018_v35  ;;  %v1491_v27 = vpop.f32.mrb[24].mxu0  ;;  %v284_v42 = vpop.permute.xlu1 %283 }
 0x1cb   :  { %v979_v16 = vadd.f32 %v1491_v27, %v1931_v34  ;;  %v970_v46 = vpop.f32.mrb[25].mxu0 }
 0x1cc   :  { %v971_v48 = vadd.f32 %v970_v46, %v1924_v22  ;;  %1462 = vmatmul.mubr.bf16.gmra.mrb[4].mxu1 %v1975_v45  ;;  %v1492_v49 = vpop.f32.mrb[26].mxu0  ;;  %1501 = vmatprep.subr.bf16.mxu0 %v1019_v15  ;;  %v1572_v22 = vld [vmem:[%s2019_s5 + $0x28] sm:$0xff]  }
 0x1cd   :  { %v982_v41 = vadd.f32 %v1492_v49, %v1934_v37  ;;  %1531 = vmatprep.subr.bf16.mxu1 %v1019_v15  ;;  %v973_v44 = vpop.f32.mrb[27].mxu0  ;;  %1502 = vmatpush3.bf16.msra.mxu0 %v1019_v15  ;;  %v1011_v34 = vmax.f32 %v979_v16, 0.0  ;;  %v299_v16 = vpop.permute.xlu0 %298 }
 0x1ce   :  { %v974_v50 = vadd.f32 %v973_v44, %v1926_v63  ;;  %1539 = vmatpush3.bf16.msra.mxu1 %v1019_v15  ;;  %1503 = vmatprep.subr.bf16.mxu0 %v1020_v0  ;;  %v1009_v57 = vmax.f32 %v971_v48, 0.0  ;;  %v294_v15 = vpop.permute.xlu1 %293 }
 0x1cf   :  { %v1012_v56 = vmax.f32 %v982_v41, 0.0  ;;  %1532 = vmatprep.subr.bf16.mxu1 %v1020_v0  ;;  %1465 = vmatprep.mubr.bf16.mxu1 %v1571_v58 }
 0x1d0   :  { %v1010_v61 = vmax.f32 %v974_v50, 0.0 }
 0x1d1   :  { %v1022_v4 = vpack.c.bf16 %v1012_v56, %v1011_v34  ;;  %1504 = vmatpush3.bf16.msra.mxu0 %v1020_v0 }
 0x1d2   :  { %v1021_v37 = vpack.c.bf16 %v1010_v61, %v1009_v57  ;;  %1540 = vmatpush3.bf16.msra.mxu1 %v1020_v0  ;;  %v1495_v7 = vpop.f32.mrb[28].mxu0  ;;  %v304_v61 = vpop.permute.xlu1 %303 }
 0x1d3   :  { %v995_v8 = vadd.f32 %v1495_v7, %v1944_v53  ;;  %v986_v63 = vpop.f32.mrb[29].mxu0 }
 0x1d4   :  { %v987_v59 = vadd.f32 %v986_v63, %v1937_v43  ;;  %1466 = vmatmul.mubr.bf16.gmra.mrb[8].mxu1 %v1572_v22  ;;  %v1496_v62 = vpop.f32.mrb[30].mxu0  ;;  %1505 = vmatprep.subr.bf16.mxu0 %v1021_v37  ;;  %v1574_v43 = vld [vmem:[%s2019_s5 + $0x38] sm:$0xff]   ;;  %s1601_s5 = smov [#allocation3]  }
 0x1d5   :  { %v998_v54 = vadd.f32 %v1496_v62, %v1947_v6  ;;  %1533 = vmatprep.subr.bf16.mxu1 %v1021_v37  ;;  %v989_v51 = vpop.f32.mrb[31].mxu0  ;;  %1506 = vmatpush3.bf16.msra.mxu0 %v1021_v37  ;;  %v1015_v53 = vmax.f32 %v995_v8, 0.0  ;;  %s1320_s2 = sshll.u32 %s1601_s5, 4  ;;  %s1321_s2 = int_to_ptr.vmem [resolvable:$true] %s1320_s2 }
 0x1d6   :  { %v990_v5 = vadd.f32 %v989_v51, %v1941_v47  ;;  %1541 = vmatpush3.bf16.msra.mxu1 %v1021_v37  ;;  %1507 = vmatprep.subr.bf16.mxu0 %v1022_v4  ;;  %v1013_v52 = vmax.f32 %v987_v59, 0.0  ;;  %v309_v37 = vpop.permute.xlu0 %308  ;;  %s1575_s27 = scalar_lea.vmem %s1321_s2, 32  ;;  %p1580_p1 = scmp.lt.s32.totalorder %s1321_s2, %s1321_s2 }
 0x1d7   :  { %v1016_v19 = vmax.f32 %v998_v54, 0.0  ;;  %1534 = vmatprep.subr.bf16.mxu1 %v1022_v4  ;;  %1469 = vmatprep.mubr.bf16.mxu1 %v1573_v18  ;;  %v314_v54 = vpop.permute.xlu1 %313  ;;  %p1576_p0 = scmp.ne.s32.totalorder %s1321_s2, %s1575_s27  ;;  %p1581_p2 = scmp.lt.s32.totalorder %s1575_s27, %s1575_s27 }
 0x1d8   :  { %v1014_v20 = vmax.f32 %v990_v5, 0.0 }
 0x1d9   :  { %v1024_v21 = vpack.c.bf16 %v1016_v19, %v1015_v53  ;;  %1508 = vmatpush3.bf16.msra.mxu0 %v1022_v4  ;;  %p1582_p3 = por %p1581_p2, %p1580_p1 }
 0x1da   :  { %v1023_v6 = vpack.c.bf16 %v1014_v20, %v1013_v52  ;;  %1542 = vmatpush3.bf16.msra.mxu1 %v1022_v4  ;;  %v319_v53 = vpop.permute.xlu0 %318 }
 0x1db   :  { %p1583_p4 = pnand %p1582_p3, %p1576_p0 }
 0x1dc   :  { %1470 = vmatmul.mubr.bf16.gmra.mrb[12].mxu1 %v1574_v43  ;;  %1509 = vmatprep.subr.bf16.mxu0 %v1023_v6 }
 0x1dd   :  { %1535 = vmatprep.subr.bf16.mxu1 %v1023_v6  ;;  %1510 = vmatpush3.bf16.msra.mxu0 %v1023_v6 }
 0x1de   :  { %1543 = vmatpush3.bf16.msra.mxu1 %v1023_v6  ;;  %1511 = vmatprep.subr.bf16.mxu0 %v1024_v21 }
 0x1df   :  { %1536 = vmatprep.subr.bf16.mxu1 %v1024_v21  ;;  %1517 = vmatprep.mubr.bf16.mxu1 %v1965_v10 }
 0x1e1   :  { %1512 = vmatpush3.bf16.msra.mxu0 %v1024_v21 }
 0x1e2   :  { %1544 = vmatpush3.bf16.msra.mxu1 %v1024_v21 }
 0x1e4   :  { %1514 = vmatmul.mubr.bf16.vlgmr.msra.gmra.mrb[32].mxu0 %v1959_v11 }
 0x1e5   :  { %1518 = vmatmul.mubr.bf16.vlgmr.msra.gmra.mrb[16].mxu1 %v1975_v45 }
 0x1e6   :  { %1521 = vmatprep.mubr.bf16.mxu1 %v1571_v58 }
 0x1ed   :  { %1522 = vmatmul.mubr.bf16.gmra.mrb[20].mxu1 %v1572_v22 }
 0x1ee   :  { %1525 = vmatprep.mubr.bf16.mxu1 %v1573_v18 }
 0x1f5   :  { %1526 = vmatmul.mubr.bf16.gmra.mrb[24].mxu1 %v1574_v43 }
 0x297   :  { %v1459_v47 = vpop.f32.mrb[0].mxu1 }
 0x298   :  { %v738_v23 = vpop.f32.mrb[1].mxu1  ;;  %v747_v33 = vadd.f32 %v1459_v47, %v269_v32  ;;  %v324_v47 = vpop.permute.xlu1 %323 }
 0x299   :  { %v739_v25 = vadd.f32 %v738_v23, %v259_v9  ;;  %v1460_v26 = vpop.f32.mrb[2].mxu1 }
 0x29a   :  { %v741_v29 = vpop.f32.mrb[3].mxu1  ;;  %v750_v60 = vadd.f32 %v1460_v26, %v274_v28 }
 0x29b   :  { %1190 = vxpose.xlu0.b32.start [1/16] %v739_v25, 128  ;;  %v742_v3 = vadd.f32 %v741_v29, %v264_v30  ;;  %v329_v25 = vpop.permute.xlu0 %328 }
 0x29f   :  { %v1463_v1 = vpop.f32.mrb[4].mxu1  ;;  %1191 = vxpose.xlu0.b32.cont [2/16] %v742_v3, 128 }
 0x2a0   :  { %v754_v12 = vpop.f32.mrb[5].mxu1  ;;  %v763_v14 = vadd.f32 %v1463_v1, %v289_v24 }
 0x2a1   :  { %v1464_v11 = vpop.f32.mrb[6].mxu1  ;;  %v755_v38 = vadd.f32 %v754_v12, %v279_v36 }
 0x2a2   :  { %v757_v35 = vpop.f32.mrb[7].mxu1  ;;  %v766_v27 = vadd.f32 %v1464_v11, %v294_v15 }
 0x2a3   :  { %1192 = vxpose.xlu0.b32.cont [3/16] %v747_v33, 128  ;;  %v758_v55 = vadd.f32 %v757_v35, %v284_v42 }
 0x2a7   :  { %v1467_v13 = vpop.f32.mrb[8].mxu1  ;;  %1193 = vxpose.xlu0.b32.cont [4/16] %v750_v60, 128 }
 0x2a8   :  { %v770_v10 = vpop.f32.mrb[9].mxu1  ;;  %v779_v8 = vadd.f32 %v1467_v13, %v309_v37 }
 0x2a9   :  { %v1468_v39 = vpop.f32.mrb[10].mxu1  ;;  %v771_v49 = vadd.f32 %v770_v10, %v299_v16 }
 0x2aa   :  { %v773_v40 = vpop.f32.mrb[11].mxu1  ;;  %v782_v51 = vadd.f32 %v1468_v39, %v314_v54 }
 0x2ab   :  { %1194 = vxpose.xlu0.b32.cont [5/16] %v755_v38, 128  ;;  %v774_v22 = vadd.f32 %v773_v40, %v304_v61 }
 0x2af   :  { %v1471_v17 = vpop.f32.mrb[12].mxu1  ;;  %1195 = vxpose.xlu0.b32.cont [6/16] %v758_v55, 128 }
 0x2b0   :  { %v786_v31 = vpop.f32.mrb[13].mxu1  ;;  %v795_v26 = vadd.f32 %v1471_v17, %v329_v25 }
 0x2b1   :  { %v1472_v45 = vpop.f32.mrb[14].mxu1  ;;  %v787_v52 = vadd.f32 %v786_v31, %v319_v53 }
 0x2b2   :  { %v789_v0 = vpop.f32.mrb[15].mxu1 }
 0x2b3   :  { %1196 = vxpose.xlu0.b32.cont [7/16] %v763_v14, 128 }
 0x2b7   :  { %v1515_v46 = vpop.f32.mrb[32].mxu0  ;;  %1197 = vxpose.xlu0.b32.cont [8/16] %v766_v27, 128 }
 0x2b8   :  { %v1519_v58 = vpop.f32.mrb[16].mxu1  ;;  %v1059_v48 = vpop.f32.mrb[33].mxu0  ;;  %v1068_v63 = vadd.f32 %v1515_v46, %v269_v32 }
 0x2b9   :  { %v1060_v41 = vadd.f32 %v1059_v48, %v259_v9  ;;  %v1075_v44 = vpop.f32.mrb[17].mxu1  ;;  %v1516_v50 = vpop.f32.mrb[34].mxu0  ;;  %v790_v9 = vadd.f32 %v789_v0, %v324_v47  ;;  %v1084_v29 = vadd.f32 %v1519_v58, %v289_v24 }
 0x2ba   :  { %v1520_v34 = vpop.f32.mrb[18].mxu1  ;;  %v1062_v56 = vpop.f32.mrb[35].mxu0  ;;  %v1071_v5 = vadd.f32 %v1516_v50, %v274_v28  ;;  %v1076_v20 = vadd.f32 %v1075_v44, %v279_v36 }
 0x2bb   :  { %v1078_v57 = vpop.f32.mrb[19].mxu1  ;;  %1260 = vxpose.xlu1.b32.start [1/16] %v1060_v41, 128  ;;  %1198 = vxpose.xlu0.b32.cont [9/16] %v771_v49, 128  ;;  %v1063_v4 = vadd.f32 %v1062_v56, %v264_v30  ;;  %v334_v30 = vpop.permute.xlu1 %333  ;;  %v1087_v1 = vadd.f32 %v1520_v34, %v294_v15 }
 0x2bc   :  { %v1079_v23 = vadd.f32 %v1078_v57, %v284_v42  ;;  %v798_v3 = vadd.f32 %v1472_v45, %v334_v30 }
 0x2bf   :  { %1261 = vxpose.xlu1.b32.cont [2/16] %v1063_v4, 128  ;;  %1199 = vxpose.xlu0.b32.cont [10/16] %v774_v22, 128 }
 0x2c0   :  { %v1523_v7 = vpop.f32.mrb[20].mxu1 }
 0x2c1   :  { %v1091_v18 = vpop.f32.mrb[21].mxu1  ;;  %v1100_v33 = vadd.f32 %v1523_v7, %v309_v37 }
 0x2c2   :  { %v1524_v59 = vpop.f32.mrb[22].mxu1  ;;  %v1092_v32 = vadd.f32 %v1091_v18, %v299_v16 }
 0x2c3   :  { %v1094_v62 = vpop.f32.mrb[23].mxu1  ;;  %1262 = vxpose.xlu1.b32.cont [3/16] %v1068_v63, 128  ;;  %1200 = vxpose.xlu0.b32.cont [11/16] %v779_v8, 128  ;;  %v1103_v11 = vadd.f32 %v1524_v59, %v314_v54 }
 0x2c4   :  { %v1095_v12 = vadd.f32 %v1094_v62, %v304_v61 }
 0x2c7   :  { %1263 = vxpose.xlu1.b32.cont [4/16] %v1071_v5, 128  ;;  %1201 = vxpose.xlu0.b32.cont [12/16] %v782_v51, 128 }
 0x2c8   :  { %v1527_v19 = vpop.f32.mrb[24].mxu1 }
 0x2c9   :  { %v1107_v43 = vpop.f32.mrb[25].mxu1  ;;  %v1116_v60 = vadd.f32 %v1527_v19, %v329_v25 }
 0x2ca   :  { %v1528_v21 = vpop.f32.mrb[26].mxu1  ;;  %v1108_v35 = vadd.f32 %v1107_v43, %v319_v53 }
 0x2cb   :  { %v1110_v6 = vpop.f32.mrb[27].mxu1  ;;  %1264 = vxpose.xlu1.b32.cont [5/16] %v1076_v20, 128  ;;  %1202 = vxpose.xlu0.b32.cont [13/16] %v787_v52, 128  ;;  %v1119_v13 = vadd.f32 %v1528_v21, %v334_v30 }
 0x2cc   :  { %v1111_v28 = vadd.f32 %v1110_v6, %v324_v47 }
 0x2cf   :  { %1265 = vxpose.xlu1.b32.cont [6/16] %v1079_v23, 128  ;;  %1203 = vxpose.xlu0.b32.cont [14/16] %v790_v9, 128 }
 0x2d3   :  { %1266 = vxpose.xlu1.b32.cont [7/16] %v1084_v29, 128  ;;  %1204 = vxpose.xlu0.b32.cont [15/16] %v795_v26, 128 }
 0x2d7   :  { %1267 = vxpose.xlu1.b32.cont [8/16] %v1087_v1, 128  ;;  %1205 = vxpose.xlu0.b32.end [16/16] %v798_v3, 128 }
 0x2db   :  { %1268 = vxpose.xlu1.b32.cont [9/16] %v1092_v32, 128 }
 0x2df   :  { %1269 = vxpose.xlu1.b32.cont [10/16] %v1095_v12, 128 }
 0x2e3   :  { %1270 = vxpose.xlu1.b32.cont [11/16] %v1100_v33, 128 }
 0x2e7   :  { %1271 = vxpose.xlu1.b32.cont [12/16] %v1103_v11, 128 }
 0x2eb   :  { %1272 = vxpose.xlu1.b32.cont [13/16] %v1108_v35, 128 }
 0x2ef   :  { %1273 = vxpose.xlu1.b32.cont [14/16] %v1111_v28, 128 }
 0x2f3   :  { %1274 = vxpose.xlu1.b32.cont [15/16] %v1116_v60, 128 }
 0x2f7   :  { %1275 = vxpose.xlu1.b32.end [16/16] %v1119_v13, 128 }
 0x300   :  { %1558 = vset.pattern.permute.xlu0 %v1599_v2 }
 0x31b   :  { %v1206_v36 = vpop.trf.xlu0 }
 0x31f   :  { %v1207_v10 = vpop.trf.xlu0 }
 0x323   :  { %v1208_v38 = vpop.trf.xlu0 }
 0x327   :  { %v1209_v39 = vpop.trf.xlu0 }
 0x32b   :  { %v1210_v40 = vpop.trf.xlu0 }
 0x32c   :  { %v1222_v41 = vmax.f32 %v1206_v36, %v1210_v40 }
 0x32f   :  { %v1211_v42 = vpop.trf.xlu0 }
 0x330   :  { %v1223_v49 = vmax.f32 %v1207_v10, %v1211_v42 }
 0x333   :  { %v1212_v55 = vpop.trf.xlu0 }
 0x334   :  { %v1224_v44 = vmax.f32 %v1208_v38, %v1212_v55 }
 0x337   :  { %v1213_v17 = vpop.trf.xlu0 }
 0x338   :  { %v1225_v50 = vmax.f32 %v1209_v39, %v1213_v17 }
 0x33b   :  { %v1276_v24 = vpop.trf.xlu1  ;;  %v1214_v31 = vpop.trf.xlu0 }
 0x33c   :  { %v1226_v61 = vmax.f32 %v1222_v41, %v1214_v31 }
 0x33f   :  { %v1277_v14 = vpop.trf.xlu1  ;;  %v1215_v45 = vpop.trf.xlu0 }
 0x340   :  { %v1227_v57 = vmax.f32 %v1223_v49, %v1215_v45 }
 0x343   :  { %v1278_v0 = vpop.trf.xlu1  ;;  %v1216_v15 = vpop.trf.xlu0 }
 0x344   :  { %v1228_v22 = vmax.f32 %v1224_v44, %v1216_v15 }
 0x347   :  { %v1279_v27 = vpop.trf.xlu1  ;;  %v1217_v16 = vpop.trf.xlu0 }
 0x348   :  { %v1229_v4 = vmax.f32 %v1225_v50, %v1217_v16 }
 0x34b   :  { %v1280_v46 = vpop.trf.xlu1  ;;  %v1218_v58 = vpop.trf.xlu0 }
 0x34c   :  { %v1230_v63 = vmax.f32 %v1226_v61, %v1218_v58  ;;  %v1292_v30 = vmax.f32 %v1276_v24, %v1280_v46 }
 0x34f   :  { %v1281_v48 = vpop.trf.xlu1  ;;  %v1219_v2 = vpop.trf.xlu0 }
 0x350   :  { %v1231_v37 = vmax.f32 %v1227_v57, %v1219_v2  ;;  %v1293_v26 = vmax.f32 %v1277_v14, %v1281_v48 }
 0x352   :  { %v1234_v62 = vmax.f32 %v1230_v63, %v1231_v37 }
 0x353   :  { %v1282_v34 = vpop.trf.xlu1  ;;  %v1220_v56 = vpop.trf.xlu0 }
 0x354   :  { %v1232_v18 = vmax.f32 %v1228_v22, %v1220_v56  ;;  %v1294_v3 = vmax.f32 %v1278_v0, %v1282_v34 }
 0x357   :  { %v1283_v7 = vpop.trf.xlu1  ;;  %v1221_v8 = vpop.trf.xlu0 }
 0x358   :  { %v1233_v59 = vmax.f32 %v1229_v4, %v1221_v8  ;;  %v1295_v1 = vmax.f32 %v1279_v27, %v1283_v7 }
 0x35a   :  { %v1235_v54 = vmax.f32 %v1232_v18, %v1233_v59 }
 0x35b   :  { %v1284_v51 = vpop.trf.xlu1 }
 0x35c   :  { %v1236_v5 = vmax.f32 %v1234_v62, %v1235_v54  ;;  %v1296_v12 = vmax.f32 %v1292_v30, %v1284_v51 }
 0x35e   :  { %v1237_v53 = vrot.slane %v1236_v5, 4 }
 0x35f   :  { %v1285_v19 = vpop.trf.xlu1 }
 0x360   :  { %v1238_v52 = vmax.f32 %v1236_v5, %v1237_v53  ;;  %v1297_v32 = vmax.f32 %v1293_v26, %v1285_v19 }
 0x362   :  { %v1239_v20 = vrot.slane %v1238_v52, 2 }
 0x363   :  { %v1286_v43 = vpop.trf.xlu1 }
 0x364   :  { %v1240_v21 = vmax.f32 %v1238_v52, %v1239_v20  ;;  %v1298_v33 = vmax.f32 %v1294_v3, %v1286_v43 }
 0x366   :  { %v1241_v6 = vrot.slane %v1240_v21, 1 }
 0x367   :  { %v1287_v47 = vpop.trf.xlu1 }
 0x368   :  { %v1242_v9 = vmax.f32 %v1240_v21, %v1241_v6  ;;  %v1299_v11 = vmax.f32 %v1295_v1, %v1287_v47 }
 0x36a   :  { %1243 = vst [vmem:[#allocation3] sm:$0x1] %v1242_v9 }
 0x36b   :  { %v1288_v23 = vpop.trf.xlu1 }
 0x36c   :  { %v1300_v60 = vmax.f32 %v1296_v12, %v1288_v23 }
 0x36f   :  { %v1289_v25 = vpop.trf.xlu1 }
 0x370   :  { %v1301_v35 = vmax.f32 %v1297_v32, %v1289_v25 }
 0x372   :  { %v1304_v10 = vmax.f32 %v1300_v60, %v1301_v35 }
 0x373   :  { %v1290_v29 = vpop.trf.xlu1 }
 0x374   :  { %v1302_v13 = vmax.f32 %v1298_v33, %v1290_v29 }
 0x377   :  { %v1291_v28 = vpop.trf.xlu1 }
 0x378   :  { %v1303_v36 = vmax.f32 %v1299_v11, %v1291_v28 }
 0x37a   :  { %v1305_v38 = vmax.f32 %v1302_v13, %v1303_v36 }
 0x37c   :  { %v1306_v39 = vmax.f32 %v1304_v10, %v1305_v38 }
 0x37e   :  { %v1307_v40 = vrot.slane %v1306_v39, 4 }
 0x380   :  { %v1308_v42 = vmax.f32 %v1306_v39, %v1307_v40 }
 0x382   :  { %v1309_v55 = vrot.slane %v1308_v42, 2 }
 0x384   :  { %v1310_v17 = vmax.f32 %v1308_v42, %v1309_v55 }
 0x386   :  { %v1311_v24 = vrot.slane %v1310_v17, 1 }
 0x388   :  { %v1312_v31 = vmax.f32 %v1310_v17, %v1311_v24 }
 0x38a   :  { %1313 = vst [vmem:[#allocation3 + $0x1] sm:$0x1] %v1312_v31 }
 0x38b   :  { %1586 = shalt.err (!%p1583_p4)
}
 0x38c   :  { %s1587_s30 = scalar_lea.hbm %s2021_s7, 32 }
 0x38d   :  { %p1588_p5 = scmp.ne.s32.totalorder %s2021_s7, %s1587_s30  ;;  %p1591_p6 = scmp.lt.u32.totalorder %s1587_s30, %s2021_s7 }
 0x38f   :  { %p1593_p7 = pnand %p1591_p6, %p1588_p5 }
 0x391   :  { %1596 = shalt.err (!%p1593_p7)
}
 0x392   :  { %1323 = dma.vmem_to_hbm [thread:$0]  %s1321_s2, 32, %s2021_s7, [#allocation4]  }
 0x393   :  { %1597 = dma.done.wait [#allocation4], 32  }
 0x394   :  { %1598 = vsyncadd [#allocation4], 4294967264 }
 0x395   :  { %1327 = vsyncpa [#allocation4], 1 }

</bundles_post_ra>
